<compile_context>
chip_gen: v7x
topology: tpu7x:2x2x1
jax: 0.10.0
libtpu: 0.0.40
codegen_flags: <defaults>
</compile_context>

<pallas_src>
import functools

import jax
import jax.numpy as jnp
from jax import lax
from jax.experimental import pallas as pl
from jax.experimental.pallas import tpu as pltpu


def _bbox_head_kernel(x_ref, w_ref, b_ref, o_ref, *, bn):
    # x_ref: (bn, C_in, THW)  activation tile, THW lane-dense (never transposed)
    # w_ref: (C_out, C_in)    VMEM-resident weight
    # b_ref: (C_out, 1)       VMEM-resident bias (broadcasts over lanes)
    # o_ref: (bn, C_out, THW) lane-dense NCHW output tile (unmasked stores)
    #
    # NOTE(ragged tails): when HW % THW != 0, the padded lane columns of x hold
    # unspecified data.  This is safe only because every output column depends
    # solely on its own input column and out-of-range output columns are masked
    # on writeback.  Do NOT add reductions / normalization over the THW axis.
    w = w_ref[...]
    b = b_ref[...]
    for i in range(bn):  # bn is a small static int; unrolled at trace time
        acc = lax.dot_general(
            w, x_ref[i],                                   # (C_out,C_in) x (C_in,THW)
            dimension_numbers=(((1,), (0,)), ((), ())),    # canonical MK x KN
            preferred_element_type=jnp.float32)
        o_ref[i] = (acc + b).astype(o_ref.dtype)


def _vmem_capacity_bytes():
    try:
        info = pltpu.get_tpu_info()
        cap = getattr(info, "vmem_capacity_bytes", None)
        if cap:
            return int(cap)
    except Exception:
        pass
    return 64 << 20  # conservative: v7x per-TensorCore VMEM


def _select_tiles(N, C_in, C_out, HW, itemsize, target_bytes, max_thw=8192):
    """Pick (bn, thw): ~target_bytes of input per grid step, thw multiple of 128."""
    thw_budget = min(max_thw, max(128, target_bytes // max(C_in * itemsize, 1)))
    if HW <= thw_budget or HW <= 128:
        thw = HW                                   # full spatial extent (legal block)
    else:
        thw = (thw_budget // 128) * 128            # lane-dense tile, ragged tail masked
    if thw == HW and N > 1:
        per_row = (C_in + C_out) * HW * itemsize   # in + out bytes per batch row
        bn = int(max(1, min(N, 8, target_bytes // max(per_row, 1))))
        while N % bn:                              # exact batch blocks (no ragged lead dim)
            bn -= 1
    else:
        bn = 1
    return bn, thw


def bbox_head_forward(x_nchw, weight, bias, num_anchors, *, target_block_bytes=None):
    """BboxHead forward: conv1x1(x) -> permute(0,2,3,1) -> view(N, -1, 4).

    x_nchw: (N, C_in, H, W); weight: (C_out, C_in, 1, 1); bias: (C_out,).
    """
    N, C_in, H, W = x_nchw.shape
    C_out = weight.shape[0]
    assert C_out == num_anchors * 4, (C_out, num_anchors)
    HW = H * W

    # Free reshapes only: collapse spatial dims; weight kept as (C_out, C_in)
    # (canonical M,K operand -- no transpose of the big activation tile needed).
    x3d = x_nchw.reshape(N, C_in, HW)
    w2d = weight.reshape(C_out, C_in)
    b2d = bias.reshape(C_out, 1)

    itemsize = jnp.dtype(x_nchw.dtype).itemsize
    if target_block_bytes is None:
        # ~4 MiB/step on 128 MiB-VMEM chips (v5e/v6e), ~2 MiB/step on v7x (64 MiB).
        target_block_bytes = (4 << 20) if _vmem_capacity_bytes() >= (100 << 20) else (2 << 20)

    bn, thw = _select_tiles(N, C_in, C_out, HW, itemsize, target_block_bytes)
    grid = (pl.cdiv(N, bn), pl.cdiv(HW, thw))

    # Explicit VMEM budget: double-buffered input + output blocks + resident consts.
    w_itemsize = jnp.dtype(weight.dtype).itemsize
    const_bytes = (C_in * C_out + C_out) * w_itemsize
    needed = 2 * (bn * C_in * thw * itemsize + bn * C_out * thw * itemsize + const_bytes)
    vmem_limit = int(min(48 << 20, max(32 << 20, 2 * needed)))

    cost = pl.CostEstimate(
        flops=2 * N * HW * C_in * C_out,
        transcendentals=0,
        bytes_accessed=int(N * HW * (C_in + C_out) * itemsize + const_bytes))

    out_nchw = pl.pallas_call(
        functools.partial(_bbox_head_kernel, bn=bn),
        out_shape=jax.ShapeDtypeStruct((N, C_out, HW), x_nchw.dtype),
        grid=grid,
        in_specs=[
            pl.BlockSpec((bn, C_in, thw), lambda n, j: (n, 0, j)),
            pl.BlockSpec((C_out, C_in), lambda n, j: (0, 0)),   # resident weight
            pl.BlockSpec((C_out, 1), lambda n, j: (0, 0)),      # resident bias
        ],
        out_specs=pl.BlockSpec((bn, C_out, thw), lambda n, j: (n, 0, j)),
        compiler_params=pltpu.CompilerParams(
            dimension_semantics=("parallel", "parallel"),
            vmem_limit_bytes=vmem_limit),
        cost_estimate=cost,
    )(x3d, w2d, b2d)

    # Channels-last permute (small XLA transpose, C_out = 4*A columns) then the
    # free view -> matches PyTorch permute(0,2,3,1).contiguous().view(N,-1,4).
    out_nhwc = jnp.transpose(out_nchw, (0, 2, 1))
    return out_nhwc.reshape(N, HW * num_anchors, 4)


def _reference(x_nchw, weight, bias, num_anchors):
    # Pure-JAX reference of the PyTorch forward (for sanity checking).
    out = lax.conv_general_dilated(
        x_nchw, weight, window_strides=(1, 1), padding="VALID",
        dimension_numbers=("NCHW", "OIHW", "NCHW"))
    out = out + bias[None, :, None, None]
    out = jnp.transpose(out, (0, 2, 3, 1))
    return out.reshape(out.shape[0], -1, 4)


def _make_inputs(key, N, C_in, H, W, num_anchors, dtype=jnp.float32):
    C_out = num_anchors * 4
    kx, kw, kb = jax.random.split(key, 3)
    x = jax.random.normal(kx, (N, C_in, H, W), dtype=dtype)
    weight = jax.random.normal(kw, (C_out, C_in, 1, 1), dtype=dtype) * 0.05
    bias = jax.random.normal(kb, (C_out,), dtype=dtype) * 0.05
    return x, weight, bias


if __name__ == "__main__":
    key = jax.random.PRNGKey(0)
    k1, k2 = jax.random.split(key)

    # Check 1: small module-consistent shapes (batch=2, inchannels=32, 16x16).
    # Whole problem fits one block -> exercises the multi-batch (bn=2) path.
    na1 = 3
    x, w, b = _make_inputs(k1, 2, 32, 16, 16, na1)
    out = jax.block_until_ready(bbox_head_forward(x, w, b, na1))
    ref = jax.block_until_ready(_reference(x, w, b, na1))
    assert out.shape == (2, 16 * 16 * na1, 4), out.shape
    assert jnp.allclose(out, ref, atol=1e-4, rtol=1e-4), "mismatch vs reference"

    # Check 2: force a small spatial tile (thw=256) on HW=45*45=2025 so the
    # tiled / ragged-tail / pipelined path is exercised (grid = (3, 8)).
    na2 = 2
    x2, w2, b2 = _make_inputs(k2, 3, 64, 45, 45, na2)
    out2 = jax.block_until_ready(
        bbox_head_forward(x2, w2, b2, na2, target_block_bytes=64 << 10))
    ref2 = jax.block_until_ready(_reference(x2, w2, b2, na2))
    assert out2.shape == (3, 45 * 45 * na2, 4), out2.shape
    assert jnp.allclose(out2, ref2, atol=1e-4, rtol=1e-4), "ragged-tail mismatch"

    print("KERNEL_OK")
</pallas_src>

<mosaic_0001>
module attributes {stable_mosaic.version = 11 : i64} {
  func.func @_bbox_head_kernel(%arg0: i32, %arg1: i32, %arg2: memref<2x32x256xf32, #tpu.memory_space<vmem>>, %arg3: memref<12x32xf32, #tpu.memory_space<vmem>>, %arg4: memref<12x1xf32, #tpu.memory_space<vmem>>, %arg5: memref<2x12x256xf32, #tpu.memory_space<vmem>>) attributes {dimension_semantics = [#tpu.dimension_semantics<parallel>, #tpu.dimension_semantics<parallel>], iteration_bounds = array<i64: 1, 1>, scalar_prefetch = 0 : i64, scratch_operands = 0 : i64, tpu.core_type = #tpu.core_type<tc>, window_params = [{transform_indices = @transform_0, window_bounds = array<i64: 2, 32, 256>}, {pipeline_mode = #tpu.pipeline_mode<synchronous>, transform_indices = @transform_1, window_bounds = array<i64: 12, 32>}, {pipeline_mode = #tpu.pipeline_mode<synchronous>, transform_indices = @transform_2, window_bounds = array<i64: 12, 1>}, {transform_indices = @transform_3, window_bounds = array<i64: 2, 12, 256>}]} {
    %c0 = arith.constant 0 : index
    %c0_0 = arith.constant 0 : index
    %0 = vector.load %arg3[%c0, %c0_0] : memref<12x32xf32, #tpu.memory_space<vmem>>, vector<12x32xf32>
    %c0_1 = arith.constant 0 : index
    %c0_2 = arith.constant 0 : index
    %1 = vector.load %arg4[%c0_1, %c0_2] : memref<12x1xf32, #tpu.memory_space<vmem>>, vector<12x1xf32>
    %c0_3 = arith.constant 0 : index
    %c0_4 = arith.constant 0 : index
    %c0_5 = arith.constant 0 : index
    %2 = vector.load %arg2[%c0_3, %c0_4, %c0_5] : memref<2x32x256xf32, #tpu.memory_space<vmem>>, vector<1x32x256xf32>
    %3 = vector.shape_cast %2 : vector<1x32x256xf32> to vector<32x256xf32>
    %cst = arith.constant dense<0.000000e+00> : vector<12x256xf32>
    %4 = tpu.matmul %0, %3, %cst {dimension_numbers = #tpu.dot_dimension_numbers<[1], [0], [0], [1], [0, 0, 1, 1], [], []>} : vector<12x32xf32>, vector<32x256xf32>, vector<12x256xf32> -> vector<12x256xf32>
    %5 = vector.broadcast %1 : vector<12x1xf32> to vector<12x256xf32>
    %6 = arith.addf %4, %5 : vector<12x256xf32>
    %c0_6 = arith.constant 0 : index
    %c0_7 = arith.constant 0 : index
    %c0_8 = arith.constant 0 : index
    %7 = vector.load %arg5[%c0_6, %c0_7, %c0_8] : memref<2x12x256xf32, #tpu.memory_space<vmem>>, vector<1x12x256xf32>
    %8 = vector.shape_cast %7 : vector<1x12x256xf32> to vector<12x256xf32>
    %9 = vector.shape_cast %6 : vector<12x256xf32> to vector<1x12x256xf32>
    tpu.vector_store %arg5[%c0_6, %c0_7, %c0_8], %9 {strides = array<i32>} : memref<2x12x256xf32, #tpu.memory_space<vmem>>, vector<1x12x256xf32>,
    %c1 = arith.constant 1 : index
    %c0_9 = arith.constant 0 : index
    %c0_10 = arith.constant 0 : index
    %10 = vector.load %arg2[%c1, %c0_9, %c0_10] : memref<2x32x256xf32, #tpu.memory_space<vmem>>, vector<1x32x256xf32>
    %11 = vector.shape_cast %10 : vector<1x32x256xf32> to vector<32x256xf32>
    %cst_11 = arith.constant dense<0.000000e+00> : vector<12x256xf32>
    %12 = tpu.matmul %0, %11, %cst_11 {dimension_numbers = #tpu.dot_dimension_numbers<[1], [0], [0], [1], [0, 0, 1, 1], [], []>} : vector<12x32xf32>, vector<32x256xf32>, vector<12x256xf32> -> vector<12x256xf32>
    %13 = vector.broadcast %1 : vector<12x1xf32> to vector<12x256xf32>
    %14 = arith.addf %12, %13 : vector<12x256xf32>
    %c1_12 = arith.constant 1 : index
    %c0_13 = arith.constant 0 : index
    %c0_14 = arith.constant 0 : index
    %15 = vector.load %arg5[%c1_12, %c0_13, %c0_14] : memref<2x12x256xf32, #tpu.memory_space<vmem>>, vector<1x12x256xf32>
    %16 = vector.shape_cast %15 : vector<1x12x256xf32> to vector<12x256xf32>
    %17 = vector.shape_cast %14 : vector<12x256xf32> to vector<1x12x256xf32>
    tpu.vector_store %arg5[%c1_12, %c0_13, %c0_14], %17 {strides = array<i32>} : memref<2x12x256xf32, #tpu.memory_space<vmem>>, vector<1x12x256xf32>,
    return
  }
  func.func @transform_0(%arg0: i32, %arg1: i32) -> (i32, i32, i32) {
    %c0_i32 = arith.constant 0 : i32
    %c0_i32_0 = arith.constant 0 : i32
    return %arg0, %c0_i32, %arg1 : i32, i32, i32
  }
  func.func @transform_1(%arg0: i32, %arg1: i32) -> (i32, i32) {
    %c0_i32 = arith.constant 0 : i32
    %c0_i32_0 = arith.constant 0 : i32
    %c0_i32_1 = arith.constant 0 : i32
    return %c0_i32, %c0_i32_0 : i32, i32
  }
  func.func @transform_2(%arg0: i32, %arg1: i32) -> (i32, i32) {
    %c0_i32 = arith.constant 0 : i32
    %c0_i32_0 = arith.constant 0 : i32
    %c0_i32_1 = arith.constant 0 : i32
    return %c0_i32, %c0_i32_0 : i32, i32
  }
  func.func @transform_3(%arg0: i32, %arg1: i32) -> (i32, i32, i32) {
    %c0_i32 = arith.constant 0 : i32
    %c0_i32_0 = arith.constant 0 : i32
    return %arg0, %c0_i32, %arg1 : i32, i32, i32
  }
}

</mosaic_0001>

<bundles_post_ra>
// kernel: tpu_custom_call.1
= control target key start
LH: loop header
LB: loop body
LE: loop exit
PB: predicated region body
PF: predicated region fallthrough
CT: control target
= control target key end

     0   :  { %8 = vsyncpa [#allocation3], 0  ;;  %s288_s12 = smov [#allocation2]   ;;  %s361_s0 = inlined_call_operand.hbm [shape: f32[2,32,256], index: 0, kind: input, shape index: {}]   ;;  %s362_s1 = inlined_call_operand.vmem [shape: f32[12,32], index: 1, kind: input, shape index: {}]   ;;  %s363_s2 = inlined_call_operand.vmem [shape: f32[12,1], index: 2, kind: input, shape index: {}]   ;;  %s364_s3 = inlined_call_operand.vmem [shape: f32[2,12,256], index: 3, kind: output, shape index: {}]  }
   0x1   :  { %s14_s13 = sshll.u32 %s288_s12, 4  ;;  %s264_s16 = scalar_lea.hbm %s361_s0, 2048  ;;  %s15_s13 = int_to_ptr.vmem [resolvable:$true] %s14_s13 }
   0x2   :  { %p265_p0 = scmp.ne.s32.totalorder %s361_s0, %s264_s16  ;;  %p268_p1 = scmp.lt.u32.totalorder %s264_s16, %s361_s0 }
   0x4   :  { %p270_p2 = pnand %p268_p1, %p265_p0 }
   0x6   :  { %273 = shalt.err (!%p270_p2)
}
   0x7   :  { %s274_s21 = scalar_lea.vmem %s15_s13, 2048  ;;  %p279_p4 = scmp.lt.s32.totalorder %s15_s13, %s15_s13 }
   0x8   :  { %p275_p3 = scmp.ne.s32.totalorder %s15_s13, %s274_s21  ;;  %p280_p5 = scmp.lt.s32.totalorder %s274_s21, %s274_s21 }
   0xa   :  { %p281_p6 = por %p280_p5, %p279_p4 }
   0xc   :  { %p282_p7 = pnand %p281_p6, %p275_p3 }
   0xe   :  { %285 = shalt.err (!%p282_p7)
}
   0xf   :  { %s289_s22 = smov 256   ;;  %s290_s23 = smov 16  }
  0x10   :  { %20 = dma.hbm_to_vmem [thread:$0]  %s361_s0, 2048, %s15_s13, [#allocation3], %s289_s22, %s289_s22, %s290_s23  }
  0x11   :  { %286 = dma.done.wait [#allocation3], 2048  }
  0x12   :  { %287 = vsyncadd [#allocation3], 4294965248  ;;  %v291_v0 = vmov 0.0   ;;  %v292_v1 = vmov 0   ;;  %v33_v2 = vld [vmem:[#allocation2 + $0x8] sm:$0xff]  ;;  %v35_v3 = vld [vmem:[#allocation2 + $0x18] sm:$0xff] }
  0x13   :  { %121 = vmatprep.mubr.f32.mxu0 %v291_v0  ;;  %211 = vmatprep.mubr.f32.mxu1 %v291_v0  ;;  %v140_v4 = vld [vmem:[#allocation2 + $0x48] sm:$0xff]  ;;  %v242_v5 = vpack.c.bf16 %v35_v3, %v33_v2  ;;  %v142_v6 = vld [vmem:[#allocation2 + $0x58] sm:$0xff]  ;;  %v32_v7 = vld [vmem:[#allocation2] sm:$0xff]  ;;  %vm50_vm0 = vcmask 261120  }
  0x14   :  { %263 = vset.pattern.permute.xlu0 %v292_v1  ;;  %v34_v8 = vld [vmem:[#allocation2 + $0x10] sm:$0xff]  ;;  %v250_v9 = vpack.c.bf16 %v142_v6, %v140_v4  ;;  %v139_v11 = vld [vmem:[#allocation2 + $0x40] sm:$0xff]  ;;  %v37_v13 = vld [vmem:[#allocation2 + $0x28] sm:$0xff] }
  0x15   :  { %v244_v10 = vpack.c.bf16 %v34_v8, %v32_v7  ;;  %v141_v12 = vld [vmem:[#allocation2 + $0x50] sm:$0xff]  ;;  %243 = vmatprep.subr.bf16.mxu0 %v242_v5  ;;  %v39_v15 = vld [vmem:[#allocation2 + $0x38] sm:$0xff]  ;;  %v144_v16 = vld [vmem:[#allocation2 + $0x68] sm:$0xff] }
  0x16   :  { %v252_v14 = vpack.c.bf16 %v141_v12, %v139_v11  ;;  %v146_v17 = vld [vmem:[#allocation2 + $0x78] sm:$0xff]  ;;  %251 = vmatprep.subr.bf16.mxu1 %v250_v9  ;;  %v246_v18 = vpack.c.bf16 %v39_v15, %v37_v13  ;;  %v36_v20 = vld [vmem:[#allocation2 + $0x20] sm:$0xff]  ;;  %v38_v21 = vld [vmem:[#allocation2 + $0x30] sm:$0xff] }
  0x17   :  { %245 = vmatpush1.bf16.msra.mxu0 %v244_v10  ;;  %v254_v19 = vpack.c.bf16 %v146_v17, %v144_v16  ;;  %v143_v22 = vld [vmem:[#allocation2 + $0x60] sm:$0xff]  ;;  %v248_v23 = vpack.c.bf16 %v38_v21, %v36_v20  ;;  %v145_v24 = vld [vmem:[#allocation2 + $0x70] sm:$0xff]  ;;  %v31_v28 = vld [vmem:[%s363_s2 + $0x8] sm:$0xf] }
  0x18   :  { %253 = vmatpush1.bf16.msra.mxu1 %v252_v14  ;;  %247 = vmatprep.subr.bf16.mxu0 %v246_v18  ;;  %v256_v25 = vpack.c.bf16 %v145_v24, %v143_v22  ;;  %v30_v26 = vld [vmem:[%s363_s2] sm:$0xff]  ;;  %v29_v29 = vld [vmem:[%s362_s1 + $0x8] sm:$0xf] }
  0x19   :  { %255 = vmatprep.subr.bf16.mxu1 %v254_v19  ;;  %42 = vperm.xlu0 %263, %v30_v26   ;;  %v28_v27 = vld [vmem:[%s362_s1] sm:$0xff] }
  0x1b   :  { %249 = vmatpush1.bf16.msra.mxu0 %v248_v23 }
  0x1c   :  { %257 = vmatpush1.bf16.msra.mxu1 %v256_v25 }
  0x1d   :  { %47 = vperm.xlu0 %263, %v31_v28  }
  0x1e   :  { %234 = vmatmul.mubr.msk.f32.vlgmr.msra.gmra.mrb[0].mxu0 %vm50_vm0, %v28_v27 }
  0x1f   :  { %236 = vmatmul.mubr.msk.f32.vlgmr.msra.gmra.mrb[0].mxu1 %vm50_vm0, %v28_v27  ;;  %127 = vmatprep.mubr.f32.mxu0 %v291_v0 }
  0x20   :  { %217 = vmatprep.mubr.f32.mxu1 %v291_v0 }
  0x22   :  { %235 = vmatmul.mubr.msk.f32.gmra.mrb[2].mxu0 %vm50_vm0, %v29_v29 }
  0x23   :  { %237 = vmatmul.mubr.msk.f32.gmra.mrb[2].mxu1 %vm50_vm0, %v29_v29 }
  0x98   :  { %v43_v30 = vpop.permute.xlu0 %42 }
  0x9c   :  { %v48_v39 = vpop.permute.xlu0 %47 }
  0xf1   :  { %v123_v31 = vpop.f32.mrb[0].mxu0 }
  0xf2   :  { %v124_v32 = vadd.f32 %v123_v31, %v43_v30  ;;  %v213_v33 = vpop.f32.mrb[0].mxu1  ;;  %v125_v34 = vpop.f32.mrb[1].mxu0 }
  0xf3   :  { %v214_v35 = vadd.f32 %v213_v33, %v43_v30  ;;  %v126_v36 = vadd.f32 %v125_v34, %v43_v30  ;;  %v215_v37 = vpop.f32.mrb[1].mxu1 }
  0xf4   :  { %134 = vst [vmem:[%s364_s3] sm:$0xff] %v124_v32  ;;  %v216_v38 = vadd.f32 %v215_v37, %v43_v30 }
  0xf5   :  { %238 = vst [vmem:[%s364_s3 + $0x20] sm:$0xff] %v214_v35  ;;  %135 = vst [vmem:[%s364_s3 + $0x8] sm:$0xff] %v126_v36  ;;  %v129_v40 = vpop.f32.mrb[2].mxu0 }
  0xf6   :  { %239 = vst [vmem:[%s364_s3 + $0x28] sm:$0xff] %v216_v38  ;;  %v130_v41 = vadd.f32 %v129_v40, %v48_v39  ;;  %v219_v42 = vpop.f32.mrb[2].mxu1  ;;  %v131_v43 = vpop.f32.mrb[3].mxu0 }
  0xf7   :  { %v220_v44 = vadd.f32 %v219_v42, %v48_v39  ;;  %v132_v45 = vadd.f32 %v131_v43, %v48_v39  ;;  %v221_v46 = vpop.f32.mrb[3].mxu1 }
  0xf8   :  { %136 = vst [vmem:[%s364_s3 + $0x10] sm:$0xf] %v130_v41  ;;  %v222_v47 = vadd.f32 %v221_v46, %v48_v39 }
  0xf9   :  { %240 = vst [vmem:[%s364_s3 + $0x30] sm:$0xf] %v220_v44  ;;  %137 = vst [vmem:[%s364_s3 + $0x18] sm:$0xf] %v132_v45 }
  0xfa   :  { %241 = vst [vmem:[%s364_s3 + $0x38] sm:$0xf] %v222_v47 }
  0xfb   :  { %233 = vsyncpa [#allocation3], 1 }

</bundles_post_ra>
